<compile_context>
chip_gen: v7x
topology: tpu7x:2x2x1
jax: 0.10.0
libtpu: 0.0.40
codegen_flags: <defaults>
</compile_context>

<pallas_src>
import functools

import jax
import jax.numpy as jnp
from jax.experimental import pallas as pl
from jax.experimental.pallas import tpu as pltpu


def _round_up(x, m):
    return ((x + m - 1) // m) * m


def _mix32(x):
    # fmix32-style stateless hash -> uniform 32-bit values. Only mul/xor/shift,
    # all of which lower on Mosaic (TPU) and in interpret mode.
    x = (x ^ (x >> 16)) * jnp.uint32(0x7FEB352D)
    x = (x ^ (x >> 15)) * jnp.uint32(0x846CA68B)
    x = x ^ (x >> 16)
    return x


def _elu(v):
    # F.elu, alpha = 1.0.  exp(min(v,0)) keeps the unselected branch finite.
    # TODO(synk): jnp.expm1 would be marginally more accurate near 0, but exp
    # is guaranteed to lower in Mosaic, so we keep exp(v)-1 here.
    return jnp.where(v > 0, v, jnp.exp(jnp.minimum(v, 0.0)) - 1.0)


def _net_kernel(seed_ref,                                   # (1,) int32 in SMEM
                x_ref, w1_ref, b1_ref, w2_ref, b2_ref, w3_ref, b3_ref,
                o_ref,
                *, tile_b, bits_w, n_hidden, n_mid, apply_dropout):
    """One row-tile of the full MLP forward (3 matmuls + ELU + dropout)."""
    x = x_ref[...]

    if apply_dropout:
        # One draw of hash bits covers both dropout masks.
        row = jax.lax.broadcasted_iota(jnp.int32, (tile_b, bits_w), 0)
        col = jax.lax.broadcasted_iota(jnp.int32, (tile_b, bits_w), 1)
        grow = (row + pl.program_id(0) * tile_b).astype(jnp.uint32)   # global row id
        seed = seed_ref[0].astype(jnp.uint32)
        key = ((grow * jnp.uint32(0x9E3779B1))
               ^ (col.astype(jnp.uint32) * jnp.uint32(0x85EBCA77))
               ^ (seed * jnp.uint32(0xC2B2AE3D)))
        bits = _mix32(key)

    # hidden: (B, n_feature) @ (n_feature, n_hidden)
    h = jnp.dot(x, w1_ref[...], preferred_element_type=jnp.float32) + b1_ref[...]
    h = _elu(h)
    if apply_dropout:
        keep1 = (bits[:, :n_hidden] >> 31) == 0                      # p = 0.5
        h = jnp.where(keep1, h * 2.0, 0.0)

    # linear_2: (B, n_hidden) @ (n_hidden, 32)
    h = jnp.dot(h, w2_ref[...], preferred_element_type=jnp.float32) + b2_ref[...]
    h = _elu(h)
    if apply_dropout:
        keep2 = ((bits[:, :n_mid] >> 30) & jnp.uint32(1)) == 0       # p = 0.5
        h = jnp.where(keep2, h * 2.0, 0.0)

    # out: (B, 32) @ (32, n_out_pad)   -- lane-dense (padded) output store
    y = jnp.dot(h, w3_ref[...], preferred_element_type=jnp.float32) + b3_ref[...]
    o_ref[...] = y.astype(o_ref.dtype)


def prepare_params(params):
    """One-time glue (NOT in the per-call hot path): transpose PyTorch-layout
    (out,in) weights to (in,out), make biases 2-D, and pad the output
    projection up to a lane-dense width (multiple of 128)."""
    w1, b1, w2, b2, w3, b3 = params
    n_output = w3.shape[0]
    n_out_pad = _round_up(n_output, 128)

    w3t = jnp.zeros((w3.shape[1], n_out_pad), jnp.float32)
    w3t = w3t.at[:, :n_output].set(jnp.asarray(w3.T, jnp.float32))
    b3p = jnp.zeros((1, n_out_pad), jnp.float32)
    b3p = b3p.at[:, :n_output].set(jnp.asarray(b3, jnp.float32))

    return dict(
        w1=jnp.asarray(w1.T, jnp.float32),
        b1=jnp.asarray(b1, jnp.float32).reshape(1, -1),
        w2=jnp.asarray(w2.T, jnp.float32),
        b2=jnp.asarray(b2, jnp.float32).reshape(1, -1),
        w3=w3t,
        b3=b3p,
        n_output=n_output,
    )


def net_forward(x, prepared, *, seed=0, dropout=True, tile_b=512):
    """x: (B, n_feature) float32.  `prepared` = prepare_params(pytorch_params).

    `dropout=True` matches the PyTorch module (F.dropout defaults apply dropout).
    Vary `seed` per call (e.g. training step) for fresh dropout masks.
    For v6e/v7x you can additionally cast x / weights to bf16 for the matmuls
    (keep preferred_element_type=f32); kept f32 here to preserve semantics.
    """
    w1, b1 = prepared["w1"], prepared["b1"]
    w2, b2 = prepared["w2"], prepared["b2"]
    w3, b3 = prepared["w3"], prepared["b3"]
    n_output = prepared["n_output"]

    B, n_feature = x.shape
    n_hidden = w1.shape[1]
    n_mid = w2.shape[1]          # 32 in the reference module
    n_out_pad = w3.shape[1]

    # Rows per grid step: large for throughput, but never bigger than needed;
    # always a multiple of 8 (sublane constraint).
    tb = min(int(tile_b), _round_up(B, 8))
    b_pad = _round_up(B, tb)
    if b_pad != B:
        x = jnp.pad(x, ((0, b_pad - B), (0, 0)))
    num_tiles = b_pad // tb

    seed_arr = jnp.asarray([seed], dtype=jnp.int32)

    kernel = functools.partial(
        _net_kernel,
        tile_b=tb,
        bits_w=max(n_hidden, n_mid),
        n_hidden=n_hidden,
        n_mid=n_mid,
        apply_dropout=dropout,
    )

    const = lambda i: (0, 0)     # weights/biases: constant block -> VMEM-resident

    out = pl.pallas_call(
        kernel,
        out_shape=jax.ShapeDtypeStruct((b_pad, n_out_pad), jnp.float32),
        grid=(num_tiles,),
        in_specs=[
            pl.BlockSpec(memory_space=pltpu.MemorySpace.SMEM),       # seed scalar
            pl.BlockSpec((tb, n_feature), lambda i: (i, 0)),         # x row tile
            pl.BlockSpec(w1.shape, const), pl.BlockSpec(b1.shape, const),
            pl.BlockSpec(w2.shape, const), pl.BlockSpec(b2.shape, const),
            pl.BlockSpec(w3.shape, const), pl.BlockSpec(b3.shape, const),
        ],
        out_specs=pl.BlockSpec((tb, n_out_pad), lambda i: (i, 0)),
        compiler_params=pltpu.CompilerParams(
            dimension_semantics=("parallel",)),
    )(seed_arr, x, w1, b1, w2, b2, w3, b3)

    return out[:B, :n_output]


def init_params(key, n_feature, n_hidden, n_output):
    """Deterministic init mimicking nn.Linear's U(-1/sqrt(fan_in), 1/sqrt(fan_in))."""
    def linear_init(k, fan_in, fan_out):
        kw, kb = jax.random.split(k)
        bound = 1.0 / jnp.sqrt(float(fan_in))
        w = jax.random.uniform(kw, (fan_out, fan_in), jnp.float32, -bound, bound)
        b = jax.random.uniform(kb, (fan_out,), jnp.float32, -bound, bound)
        return w, b

    k1, k2, k3 = jax.random.split(key, 3)
    w1, b1 = linear_init(k1, n_feature, n_hidden)   # hidden
    w2, b2 = linear_init(k2, n_hidden, 32)          # linear_2
    w3, b3 = linear_init(k3, 32, n_output)          # out
    return (w1, b1, w2, b2, w3, b3)


if __name__ == "__main__":
    key = jax.random.PRNGKey(0)
    kx, kp = jax.random.split(key)

    B, n_feature, n_hidden, n_output = 8, 32, 64, 8
    x = jax.random.normal(kx, (B, n_feature), jnp.float32)
    params = init_params(kp, n_feature, n_hidden, n_output)

    # One-time parameter preparation (outside the per-call hot path).
    prepared = prepare_params(params)

    # Training-mode forward (dropout active, matching F.dropout defaults).
    out = net_forward(x, prepared, seed=0, dropout=True)
    out = jax.block_until_ready(out)
    assert out.shape == (B, n_output)
    assert bool(jnp.all(jnp.isfinite(out)))

    # Numerical validation of the deterministic path (dropout disabled) against
    # a pure-JAX reference of the same forward.
    out_eval = jax.block_until_ready(net_forward(x, prepared, dropout=False))
    w1, b1, w2, b2, w3, b3 = params
    h = _elu(x @ w1.T + b1)
    h = _elu(h @ w2.T + b2)
    ref = h @ w3.T + b3
    max_err = float(jnp.max(jnp.abs(out_eval - ref)))
    assert jnp.allclose(out_eval, ref, rtol=1e-4, atol=1e-4), max_err

    print("KERNEL_OK")
</pallas_src>

<mosaic_0001>
module attributes {stable_mosaic.version = 11 : i64} {
  func.func @_net_kernel(%arg0: i32, %arg1: memref<1xi32, #tpu.memory_space<smem>>, %arg2: memref<8x32xf32, #tpu.memory_space<vmem>>, %arg3: memref<32x64xf32, #tpu.memory_space<vmem>>, %arg4: memref<1x64xf32, #tpu.memory_space<vmem>>, %arg5: memref<64x32xf32, #tpu.memory_space<vmem>>, %arg6: memref<1x32xf32, #tpu.memory_space<vmem>>, %arg7: memref<32x128xf32, #tpu.memory_space<vmem>>, %arg8: memref<1x128xf32, #tpu.memory_space<vmem>>, %arg9: memref<8x128xf32, #tpu.memory_space<vmem>>) attributes {dimension_semantics = [#tpu.dimension_semantics<parallel>], iteration_bounds = array<i64: 1>, scalar_prefetch = 0 : i64, scratch_operands = 0 : i64, tpu.core_type = #tpu.core_type<tc>, window_params = [{transform_indices = @transform_0, window_bounds = array<i64: 1>}, {transform_indices = @transform_1, window_bounds = array<i64: 8, 32>}, {pipeline_mode = #tpu.pipeline_mode<synchronous>, transform_indices = @transform_2, window_bounds = array<i64: 32, 64>}, {pipeline_mode = #tpu.pipeline_mode<synchronous>, transform_indices = @transform_3, window_bounds = array<i64: 1, 64>}, {pipeline_mode = #tpu.pipeline_mode<synchronous>, transform_indices = @transform_4, window_bounds = array<i64: 64, 32>}, {pipeline_mode = #tpu.pipeline_mode<synchronous>, transform_indices = @transform_5, window_bounds = array<i64: 1, 32>}, {pipeline_mode = #tpu.pipeline_mode<synchronous>, transform_indices = @transform_6, window_bounds = array<i64: 32, 128>}, {pipeline_mode = #tpu.pipeline_mode<synchronous>, transform_indices = @transform_7, window_bounds = array<i64: 1, 128>}, {transform_indices = @transform_8, window_bounds = array<i64: 8, 128>}]} {
    %c0 = arith.constant 0 : index
    %c0_0 = arith.constant 0 : index
    %0 = vector.load %arg2[%c0, %c0_0] : memref<8x32xf32, #tpu.memory_space<vmem>>, vector<8x32xf32>
    %1 = tpu.iota {dimensions = array<i32: 0>} : vector<8x64xi32>
    %2 = tpu.iota {dimensions = array<i32: 1>} : vector<8x64xi32>
    %c8_i32 = arith.constant 8 : i32
    %3 = arith.muli %arg0, %c8_i32 : i32
    %4 = vector.broadcast %3 : i32 to vector<8x64xi32>
    %5 = arith.addi %1, %4 : vector<8x64xi32>
    %c0_1 = arith.constant 0 : index
    %6 = memref.load %arg1[%c0_1] : memref<1xi32, #tpu.memory_space<smem>>
    %c-1640531535_i32 = arith.constant -1640531535 : i32
    %7 = vector.broadcast %c-1640531535_i32 : i32 to vector<8x64xi32>
    %8 = arith.muli %5, %7 : vector<8x64xi32>
    %c-2048144777_i32 = arith.constant -2048144777 : i32
    %9 = vector.broadcast %c-2048144777_i32 : i32 to vector<8x64xi32>
    %10 = arith.muli %2, %9 : vector<8x64xi32>
    %11 = arith.xori %8, %10 : vector<8x64xi32>
    %c-1028477379_i32 = arith.constant -1028477379 : i32
    %12 = arith.muli %6, %c-1028477379_i32 : i32
    %13 = vector.broadcast %12 : i32 to vector<8x64xi32>
    %14 = arith.xori %11, %13 : vector<8x64xi32>
    %c16_i32 = arith.constant 16 : i32
    %15 = vector.broadcast %c16_i32 : i32 to vector<8x64xi32>
    %16 = arith.shrui %14, %15 : vector<8x64xi32>
    %17 = arith.xori %14, %16 : vector<8x64xi32>
    %c2146121005_i32 = arith.constant 2146121005 : i32
    %18 = vector.broadcast %c2146121005_i32 : i32 to vector<8x64xi32>
    %19 = arith.muli %17, %18 : vector<8x64xi32>
    %c15_i32 = arith.constant 15 : i32
    %20 = vector.broadcast %c15_i32 : i32 to vector<8x64xi32>
    %21 = arith.shrui %19, %20 : vector<8x64xi32>
    %22 = arith.xori %19, %21 : vector<8x64xi32>
    %c-2073254261_i32 = arith.constant -2073254261 : i32
    %23 = vector.broadcast %c-2073254261_i32 : i32 to vector<8x64xi32>
    %24 = arith.muli %22, %23 : vector<8x64xi32>
    %c16_i32_2 = arith.constant 16 : i32
    %25 = vector.broadcast %c16_i32_2 : i32 to vector<8x64xi32>
    %26 = arith.shrui %24, %25 : vector<8x64xi32>
    %27 = arith.xori %24, %26 : vector<8x64xi32>
    %c0_3 = arith.constant 0 : index
    %c0_4 = arith.constant 0 : index
    %28 = vector.load %arg3[%c0_3, %c0_4] : memref<32x64xf32, #tpu.memory_space<vmem>>, vector<32x64xf32>
    %cst = arith.constant dense<0.000000e+00> : vector<8x64xf32>
    %29 = tpu.matmul %0, %28, %cst {dimension_numbers = #tpu.dot_dimension_numbers<[1], [0], [0], [1], [0, 0, 1, 1], [], []>} : vector<8x32xf32>, vector<32x64xf32>, vector<8x64xf32> -> vector<8x64xf32>
    %c0_5 = arith.constant 0 : index
    %c0_6 = arith.constant 0 : index
    %30 = vector.load %arg4[%c0_5, %c0_6] : memref<1x64xf32, #tpu.memory_space<vmem>>, vector<1x64xf32>
    %31 = vector.broadcast %30 : vector<1x64xf32> to vector<8x64xf32>
    %32 = arith.addf %29, %31 : vector<8x64xf32>
    %cst_7 = arith.constant 0.000000e+00 : f32
    %33 = vector.broadcast %cst_7 : f32 to vector<8x64xf32>
    %34 = arith.cmpf ogt, %32, %33 : vector<8x64xf32>
    %cst_8 = arith.constant 0.000000e+00 : f32
    %35 = vector.broadcast %cst_8 : f32 to vector<8x64xf32>
    %36 = arith.minimumf %32, %35 : vector<8x64xf32>
    %37 = math.exp %36 : vector<8x64xf32>
    %cst_9 = arith.constant 1.000000e+00 : f32
    %38 = vector.broadcast %cst_9 : f32 to vector<8x64xf32>
    %39 = arith.subf %37, %38 : vector<8x64xf32>
    %40 = arith.select %34, %32, %39 : vector<8x64xi1>, vector<8x64xf32>
    %c31_i32 = arith.constant 31 : i32
    %41 = vector.broadcast %c31_i32 : i32 to vector<8x64xi32>
    %42 = arith.shrui %27, %41 : vector<8x64xi32>
    %c0_i32 = arith.constant 0 : i32
    %43 = vector.broadcast %c0_i32 : i32 to vector<8x64xi32>
    %44 = arith.cmpi eq, %42, %43 : vector<8x64xi32>
    %cst_10 = arith.constant 2.000000e+00 : f32
    %45 = vector.broadcast %cst_10 : f32 to vector<8x64xf32>
    %46 = arith.mulf %40, %45 : vector<8x64xf32>
    %cst_11 = arith.constant 0.000000e+00 : f32
    %47 = vector.broadcast %cst_11 : f32 to vector<8x64xf32>
    %48 = arith.select %44, %46, %47 : vector<8x64xi1>, vector<8x64xf32>
    %c0_12 = arith.constant 0 : index
    %c0_13 = arith.constant 0 : index
    %49 = vector.load %arg5[%c0_12, %c0_13] : memref<64x32xf32, #tpu.memory_space<vmem>>, vector<64x32xf32>
    %cst_14 = arith.constant dense<0.000000e+00> : vector<8x32xf32>
    %50 = tpu.matmul %48, %49, %cst_14 {dimension_numbers = #tpu.dot_dimension_numbers<[1], [0], [0], [1], [0, 0, 1, 1], [], []>} : vector<8x64xf32>, vector<64x32xf32>, vector<8x32xf32> -> vector<8x32xf32>
    %c0_15 = arith.constant 0 : index
    %c0_16 = arith.constant 0 : index
    %51 = vector.load %arg6[%c0_15, %c0_16] : memref<1x32xf32, #tpu.memory_space<vmem>>, vector<1x32xf32>
    %52 = vector.broadcast %51 : vector<1x32xf32> to vector<8x32xf32>
    %53 = arith.addf %50, %52 : vector<8x32xf32>
    %cst_17 = arith.constant 0.000000e+00 : f32
    %54 = vector.broadcast %cst_17 : f32 to vector<8x32xf32>
    %55 = arith.cmpf ogt, %53, %54 : vector<8x32xf32>
    %cst_18 = arith.constant 0.000000e+00 : f32
    %56 = vector.broadcast %cst_18 : f32 to vector<8x32xf32>
    %57 = arith.minimumf %53, %56 : vector<8x32xf32>
    %58 = math.exp %57 : vector<8x32xf32>
    %cst_19 = arith.constant 1.000000e+00 : f32
    %59 = vector.broadcast %cst_19 : f32 to vector<8x32xf32>
    %60 = arith.subf %58, %59 : vector<8x32xf32>
    %61 = arith.select %55, %53, %60 : vector<8x32xi1>, vector<8x32xf32>
    %62 = vector.extract_strided_slice %27 {offsets = [0, 0], sizes = [8, 32], strides = [1, 1]} : vector<8x64xi32> to vector<8x32xi32>
    %c30_i32 = arith.constant 30 : i32
    %63 = vector.broadcast %c30_i32 : i32 to vector<8x32xi32>
    %64 = arith.shrui %62, %63 : vector<8x32xi32>
    %c1_i32 = arith.constant 1 : i32
    %65 = vector.broadcast %c1_i32 : i32 to vector<8x32xi32>
    %66 = arith.andi %64, %65 : vector<8x32xi32>
    %c0_i32_20 = arith.constant 0 : i32
    %67 = vector.broadcast %c0_i32_20 : i32 to vector<8x32xi32>
    %68 = arith.cmpi eq, %66, %67 : vector<8x32xi32>
    %cst_21 = arith.constant 2.000000e+00 : f32
    %69 = vector.broadcast %cst_21 : f32 to vector<8x32xf32>
    %70 = arith.mulf %61, %69 : vector<8x32xf32>
    %cst_22 = arith.constant 0.000000e+00 : f32
    %71 = vector.broadcast %cst_22 : f32 to vector<8x32xf32>
    %72 = arith.select %68, %70, %71 : vector<8x32xi1>, vector<8x32xf32>
    %c0_23 = arith.constant 0 : index
    %c0_24 = arith.constant 0 : index
    %73 = vector.load %arg7[%c0_23, %c0_24] : memref<32x128xf32, #tpu.memory_space<vmem>>, vector<32x128xf32>
    %cst_25 = arith.constant dense<0.000000e+00> : vector<8x128xf32>
    %74 = tpu.matmul %72, %73, %cst_25 {dimension_numbers = #tpu.dot_dimension_numbers<[1], [0], [0], [1], [0, 0, 1, 1], [], []>} : vector<8x32xf32>, vector<32x128xf32>, vector<8x128xf32> -> vector<8x128xf32>
    %c0_26 = arith.constant 0 : index
    %c0_27 = arith.constant 0 : index
    %75 = vector.load %arg8[%c0_26, %c0_27] : memref<1x128xf32, #tpu.memory_space<vmem>>, vector<1x128xf32>
    %76 = vector.broadcast %75 : vector<1x128xf32> to vector<8x128xf32>
    %77 = arith.addf %74, %76 : vector<8x128xf32>
    %c0_28 = arith.constant 0 : index
    %c0_29 = arith.constant 0 : index
    %78 = vector.load %arg9[%c0_28, %c0_29] : memref<8x128xf32, #tpu.memory_space<vmem>>, vector<8x128xf32>
    tpu.vector_store %arg9[%c0_28, %c0_29], %77 {strides = array<i32>} : memref<8x128xf32, #tpu.memory_space<vmem>>, vector<8x128xf32>,
    return
  }
  func.func @transform_0(%arg0: i32) -> i32 {
    %c0_i32 = arith.constant 0 : i32
    %c0_i32_0 = arith.constant 0 : i32
    return %c0_i32 : i32
  }
  func.func @transform_1(%arg0: i32) -> (i32, i32) {
    %c0_i32 = arith.constant 0 : i32
    %c0_i32_0 = arith.constant 0 : i32
    return %arg0, %c0_i32 : i32, i32
  }
  func.func @transform_2(%arg0: i32) -> (i32, i32) {
    %c0_i32 = arith.constant 0 : i32
    %c0_i32_0 = arith.constant 0 : i32
    %c0_i32_1 = arith.constant 0 : i32
    return %c0_i32, %c0_i32_0 : i32, i32
  }
  func.func @transform_3(%arg0: i32) -> (i32, i32) {
    %c0_i32 = arith.constant 0 : i32
    %c0_i32_0 = arith.constant 0 : i32
    %c0_i32_1 = arith.constant 0 : i32
    return %c0_i32, %c0_i32_0 : i32, i32
  }
  func.func @transform_4(%arg0: i32) -> (i32, i32) {
    %c0_i32 = arith.constant 0 : i32
    %c0_i32_0 = arith.constant 0 : i32
    %c0_i32_1 = arith.constant 0 : i32
    return %c0_i32, %c0_i32_0 : i32, i32
  }
  func.func @transform_5(%arg0: i32) -> (i32, i32) {
    %c0_i32 = arith.constant 0 : i32
    %c0_i32_0 = arith.constant 0 : i32
    %c0_i32_1 = arith.constant 0 : i32
    return %c0_i32, %c0_i32_0 : i32, i32
  }
  func.func @transform_6(%arg0: i32) -> (i32, i32) {
    %c0_i32 = arith.constant 0 : i32
    %c0_i32_0 = arith.constant 0 : i32
    %c0_i32_1 = arith.constant 0 : i32
    return %c0_i32, %c0_i32_0 : i32, i32
  }
  func.func @transform_7(%arg0: i32) -> (i32, i32) {
    %c0_i32 = arith.constant 0 : i32
    %c0_i32_0 = arith.constant 0 : i32
    %c0_i32_1 = arith.constant 0 : i32
    return %c0_i32, %c0_i32_0 : i32, i32
  }
  func.func @transform_8(%arg0: i32) -> (i32, i32) {
    %c0_i32 = arith.constant 0 : i32
    %c0_i32_0 = arith.constant 0 : i32
    return %arg0, %c0_i32 : i32, i32
  }
}

</mosaic_0001>

<bundles_post_ra>
// kernel: tpu_custom_call.1
= control target key start
LH: loop header
LB: loop body
LE: loop exit
PB: predicated region body
PF: predicated region fallthrough
CT: control target
= control target key end

     0   :  { %v472_v3 = vmov 0.0|0.0   ;;  %vm473_vm0 = vmmov 0   ;;  %v474_v6 = vmov 0.0   ;;  %s606_s0 = inlined_call_operand.<no memory space> [shape: s32[1], index: 0, kind: input, shape index: {}]   ;;  %s607_s1 = inlined_call_operand.vmem [shape: f32[8,32], index: 1, kind: input, shape index: {}]   ;;  %s608_s2 = inlined_call_operand.vmem [shape: f32[32,64], index: 2, kind: input, shape index: {}]   ;;  %s609_s3 = inlined_call_operand.vmem [shape: f32[1,64], index: 3, kind: input, shape index: {}]   ;;  %s610_s4 = inlined_call_operand.vmem [shape: f32[64,32], index: 4, kind: input, shape index: {}]   ;;  %s611_s5 = inlined_call_operand.vmem [shape: f32[1,32], index: 5, kind: input, shape index: {}]   ;;  %s612_s6 = inlined_call_operand.vmem [shape: f32[32,128], index: 6, kind: input, shape index: {}]   ;;  %s613_s7 = inlined_call_operand.vmem [shape: f32[1,128], index: 7, kind: input, shape index: {}]   ;;  %s614_s8 = inlined_call_operand.hbm [shape: f32[8,128], index: 8, kind: output, shape index: {}]  }
   0x1   :  { %v54_v0 = vld [vmem:[%s608_s2] sm:$0xff]  ;;  %v55_v1 = vld [vmem:[%s608_s2 + $0x8] sm:$0xff]  ;;  %v56_v2 = vld [vmem:[%s608_s2 + $0x10] sm:$0xff]  ;;  %416 = vmatprep.subr.bf16.mxu0 %v472_v3  ;;  %383 = vmatprep.mubr.msk.f32.mxu0 %vm473_vm0, %v474_v6 }
   0x2   :  { %v417_v4 = vpack.c.bf16 %v55_v1, %v54_v0  ;;  %v57_v5 = vld [vmem:[%s608_s2 + $0x18] sm:$0xff]  ;;  %422 = vmatprep.subr.bf16.mxu1 %v472_v3  ;;  %402 = vmatprep.mubr.msk.f32.mxu1 %vm473_vm0, %v474_v6 }
   0x3   :  { %14 = vsyncpa [#allocation4], 0  ;;  %v420_v7 = vpack.c.bf16 %v57_v5, %v56_v2  ;;  %v31_v8 = vld [vmem:[%s607_s1] sm:$0xff]  ;;  %vm65_vm1 = vcmask 261120   ;;  %v150_v10 = vld [vmem:[%s610_s4 + $0x8] sm:$0xff]  ;;  %v32_v21 = vlaneseq  ;;  %vm164_vm4 = vcmask 523264  }
   0x4   :  { %418 = vmatpush3.bf16.msra.mxu0 %v417_v4  ;;  %v149_v9 = vld [vmem:[%s610_s4] sm:$0xff]  ;;  %v151_v12 = vld [vmem:[%s610_s4 + $0x10] sm:$0xff]  ;;  %v152_v13 = vld [vmem:[%s610_s4 + $0x18] sm:$0xff]  ;;  %s43_s9 = smul.u32 3266489917, %s606_s0 }
   0x5   :  { %419 = vmatprep.subr.bf16.mxu0 %v472_v3  ;;  %v423_v11 = vpack.c.bf16 %v150_v10, %v149_v9  ;;  %v426_v14 = vpack.c.bf16 %v152_v13, %v151_v12  ;;  %v153_v15 = vld [vmem:[%s610_s4 + $0x20] sm:$0xff]  ;;  %v154_v16 = vld [vmem:[%s610_s4 + $0x28] sm:$0xff]  ;;  %v155_v18 = vld [vmem:[%s610_s4 + $0x30] sm:$0xff]  ;;  %v33_v22 = vshrl.u32 %v32_v21, 7  ;;  %v35_v23 = vand.u32 127, %v32_v21 }
   0x6   :  { %v429_v17 = vpack.c.bf16 %v154_v16, %v153_v15  ;;  %v156_v19 = vld [vmem:[%s610_s4 + $0x38] sm:$0xff]  ;;  %v44_v27 = vstv %s43_s9  ;;  %v348_v33 = vld [vmem:[%s609_s3] ss:$0 sm:$0xff]  ;;  %v250_v50 = vld [vmem:[%s612_s6 + $0x8] sm:$0xff] }
   0x7   :  { %424 = vmatpush3.bf16.msra.mxu1 %v423_v11  ;;  %v432_v20 = vpack.c.bf16 %v156_v19, %v155_v18  ;;  %v40_v24 = vmul.u32 2654435761, %v33_v22  ;;  %v41_v25 = vmul.u32 2246822519, %v35_v23  ;;  %v249_v49 = vld [vmem:[%s612_s6] sm:$0xff]  ;;  %v251_v52 = vld [vmem:[%s612_s6 + $0x10] sm:$0xff] }
   0x8   :  { %421 = vmatpush3.bf16.msra.mxu0 %v420_v7  ;;  %425 = vmatprep.subr.bf16.mxu1 %v472_v3  ;;  %v435_v51 = vpack.c.bf16 %v250_v50, %v249_v49  ;;  %v252_v53 = vld [vmem:[%s612_s6 + $0x18] sm:$0xff]  ;;  %v351_v55 = vld [vmem:[%s611_s5] ss:$0 sm:$0xff]  ;;  %s475_s5 = smov [#allocation3]  }
   0x9   :  { %434 = vmatprep.subr.bf16.mxu0 %v472_v3  ;;  %v42_v26 = vxor.u32 %v41_v25, %v40_v24  ;;  %v438_v54 = vpack.c.bf16 %v252_v53, %v251_v52  ;;  %v354_v4 = vld [vmem:[%s613_s7] ss:$0 sm:$0xff]  ;;  %s340_s1 = sshll.u32 %s475_s5, 4  ;;  %s341_s1 = int_to_ptr.vmem [resolvable:$true] %s340_s1 }
   0xa   :  { %s448_s19 = scalar_lea.vmem %s341_s1, 128  ;;  %p453_p1 = scmp.lt.s32.totalorder %s341_s1, %s341_s1 }
   0xb   :  { %384 = vmatmul.mubr.msk.f32.vlgmr.msra.gmra.mrb[0].mxu0 %vm65_vm1, %v31_v8  ;;  %427 = vmatpush3.bf16.msra.mxu1 %v426_v14  ;;  %v45_v28 = vxor.u32 %v44_v27, %v42_v26  ;;  %p449_p0 = scmp.ne.s32.totalorder %s341_s1, %s448_s19  ;;  %p454_p2 = scmp.lt.s32.totalorder %s448_s19, %s448_s19 }
   0xc   :  { %413 = vmatprep.mubr.msk.f32.mxu0 %vm473_vm0, %v474_v6  ;;  %428 = vmatprep.subr.bf16.mxu1 %v472_v3 }
   0xd   :  { %v46_v29 = vshrl.u32 %v45_v28, 16  ;;  %436 = vmatpush3.bf16.msra.mxu0 %v435_v51  ;;  %p455_p3 = por %p454_p2, %p453_p1 }
   0xe   :  { %437 = vmatprep.subr.bf16.mxu0 %v472_v3 }
   0xf   :  { %430 = vmatpush3.bf16.msra.mxu1 %v429_v17  ;;  %v47_v30 = vxor.u32 %v46_v29, %v45_v28  ;;  %p456_p4 = pnand %p455_p3, %p449_p0 }
  0x10   :  { %431 = vmatprep.subr.bf16.mxu1 %v472_v3 }
  0x11   :  { %v48_v31 = vmul.u32 2146121005, %v47_v30  ;;  %439 = vmatpush3.bf16.msra.mxu0 %v438_v54 }
  0x13   :  { %433 = vmatpush3.bf16.msra.mxu1 %v432_v20  ;;  %v49_v32 = vshrl.u32 %v48_v31, 15 }
  0x15   :  { %v50_v35 = vxor.u32 %v49_v32, %v48_v31 }
  0x17   :  { %v51_v39 = vmul.u32 2221713035, %v50_v35 }
  0x19   :  { %v52_v41 = vshrl.u32 %v51_v39, 16 }
  0x1b   :  { %v53_v42 = vxor.u32 %v52_v41, %v51_v39 }
  0x1d   :  { %v145_v43 = vshrl.u32 %v53_v42, 31  ;;  %v244_v61 = vshrl.u32 %v53_v42, 30 }
  0x1f   :  { %vm146_vm3 = vcmp.eq.s32.totalorder %v145_v43, 0  ;;  %v245_v62 = vand.u32 1, %v244_v61 }
  0x21   :  { %vm246_vm6 = vcmp.eq.s32.totalorder %v245_v62, 0 }
  0xde   :  { %v135_v34 = vpop.f32.mrb[0].mxu0 }
  0xdf   :  { %v136_v36 = vadd.f32 %v348_v33, %v135_v34  ;;  %v385_v37 = vpop.f32.mrb[1].mxu0 }
  0xe1   :  { %v140_v38 = vmin.f32 %v136_v36, 0.0  ;;  %vm139_vm2 = vcmp.gt.f32.partialorder %v136_v36, 0.0 }
  0xe3   :  { %v141_v40 = vmul.f32 1.442695, %v140_v38 }
  0xe5   :  { %444 = vpow2.f32 %v141_v40 }
  0xef   :  { %v445_v44 = vpop.eup %444 }
  0xf0   :  { %v350_v45 = vadd.f32 -1.0, %v445_v44 }
  0xf2   :  { %v144_v46 = vsel %vm139_vm2, %v136_v36, %v350_v45 }
  0xf3   :  { %v147_v47 = vmul.f32 2.0, %v144_v46 }
  0xf5   :  { %v148_v48 = vsel %vm146_vm3, %v147_v47, 0.0 }
  0xf6   :  { %403 = vmatmul.mubr.msk.f32.vlgmr.msra.gmra.mrb[0].mxu1 %vm164_vm4, %v148_v48 }
 0x1c9   :  { %v234_v56 = vpop.f32.mrb[0].mxu1 }
 0x1ca   :  { %v235_v57 = vadd.f32 %v351_v55, %v234_v56  ;;  %v404_v58 = vpop.f32.mrb[1].mxu1 }
 0x1cc   :  { %v239_v59 = vmin.f32 %v235_v57, 0.0  ;;  %vm238_vm5 = vcmp.gt.f32.partialorder %v235_v57, 0.0 }
 0x1ce   :  { %v240_v60 = vmul.f32 1.442695, %v239_v59 }
 0x1d0   :  { %446 = vpow2.f32 %v240_v60 }
 0x1da   :  { %v447_v63 = vpop.eup %446 }
 0x1db   :  { %v353_v0 = vadd.f32 -1.0, %v447_v63 }
 0x1dd   :  { %v243_v1 = vsel %vm238_vm5, %v235_v57, %v353_v0 }
 0x1de   :  { %v247_v2 = vmul.f32 2.0, %v243_v1 }
 0x1e0   :  { %v248_v3 = vsel %vm246_vm6, %v247_v2, 0.0 }
 0x1e1   :  { %414 = vmatmul.mubr.msk.f32.vlgmr.msra.gmra.mrb[2].mxu0 %vm65_vm1, %v248_v3 }
 0x2b4   :  { %v329_v5 = vpop.f32.mrb[2].mxu0 }
 0x2b5   :  { %v330_v6 = vadd.f32 %v354_v4, %v329_v5  ;;  %v415_v7 = vpop.f32.mrb[3].mxu0 }
 0x2b7   :  { %333 = vst [vmem:[#allocation3] sm:$0xff] %v330_v6 }
 0x2b8   :  { %459 = shalt.err (!%p456_p4)
}
 0x2b9   :  { %s460_s22 = scalar_lea.hbm %s614_s8, 128 }
 0x2ba   :  { %p461_p5 = scmp.ne.s32.totalorder %s614_s8, %s460_s22  ;;  %p464_p6 = scmp.lt.u32.totalorder %s460_s22, %s614_s8 }
 0x2bc   :  { %p466_p7 = pnand %p464_p6, %p461_p5 }
 0x2be   :  { %469 = shalt.err (!%p466_p7)
}
 0x2bf   :  { %343 = dma.vmem_to_hbm [thread:$0]  %s341_s1, 128, %s614_s8, [#allocation4]  }
 0x2c0   :  { %470 = dma.done.wait [#allocation4], 128  }
 0x2c1   :  { %471 = vsyncadd [#allocation4], 4294967168 }
 0x2c2   :  { %347 = vsyncpa [#allocation4], 1 }

</bundles_post_ra>
